<compile_context>
chip_gen: v5e
topology: v5e:2x2
jax: 0.10.0
libtpu: 0.0.40
codegen_flags: <defaults>
</compile_context>

<pallas_src>
import jax
import jax.numpy as jnp
from jax.experimental import pallas as pl
from jax.experimental.pallas import tpu as pltpu

HIDDEN = 256
ACT_PAD = 128     # lane-dense padded action head
SUB = 16          # bf16-friendly sublane granularity for batch tiles


def _round_up(x, m):
    return ((x + m - 1) // m) * m


# ---------------------------------------------------------------------------
# Kernel
# ---------------------------------------------------------------------------
def actor_kernel(s_ref, w1_ref, w23_ref, b12_ref, aux_ref, o_ref):
    # fc1 + relu   (bf16 operands, f32 accumulate, f32 elementwise)
    h1 = jnp.dot(s_ref[...], w1_ref[...], preferred_element_type=jnp.float32)
    h1 = jnp.maximum(h1 + b12_ref[0:1, :], 0.0)

    # fc2 + relu   (w2 is the first 256 lanes of the merged weight slab)
    h2 = jnp.dot(h1.astype(jnp.bfloat16), w23_ref[:, :HIDDEN],
                 preferred_element_type=jnp.float32)
    h2 = jnp.maximum(h2 + b12_ref[1:2, :], 0.0)

    # mu + tanh + action rescale on the 128-lane padded head.
    # Padded lanes have w3 = b3 = gain = off = 0, so they produce exactly 0.
    z = jnp.dot(h2.astype(jnp.bfloat16), w23_ref[:, HIDDEN:],
                preferred_element_type=jnp.float32)
    b3 = aux_ref[0:1, :]
    gain = aux_ref[1:2, :]
    off = aux_ref[2:3, :]
    o_ref[...] = (gain * jnp.tanh(z + b3) + off).astype(o_ref.dtype)


# ---------------------------------------------------------------------------
# Wrapper
# ---------------------------------------------------------------------------
def _choose_batch_tile(B, block_b):
    """Batch tile: multiple of 16 sublanes; single tile for tiny batches,
    >= 2 grid steps for B > 128 so v7x's two TensorCores both get work."""
    if B <= 128:
        return _round_up(max(B, 1), SUB)
    half = _round_up(pl.cdiv(B, 2), SUB)
    return min(_round_up(block_b, SUB), half)


def actor_forward(s, packed, action_dim, *, block_b=1024, return_padded=False):
    """s: (B, state_dim) float32/bfloat16.
    Returns (B, action_dim) bfloat16 actions (or the full padded bf16 slab
    when return_padded=True, for fused downstream consumption)."""
    w1, w23, b12, aux = packed
    B, state_dim = s.shape

    tb = _choose_batch_tile(B, block_b)
    b_pad = _round_up(B, tb)

    s = s.astype(jnp.bfloat16)                      # cast once, halves s DMA
    if b_pad != B:
        s = jnp.pad(s, ((0, b_pad - B), (0, 0)))

    grid = (b_pad // tb,)

    def const(shape):
        # Weights / biases: constant block index -> fetched once, VMEM-resident.
        return pl.BlockSpec(shape, lambda i: (0,) * len(shape))

    out = pl.pallas_call(
        actor_kernel,
        out_shape=jax.ShapeDtypeStruct((b_pad, ACT_PAD), jnp.bfloat16),
        grid=grid,
        in_specs=[
            pl.BlockSpec((tb, state_dim), lambda i: (i, 0)),
            const(w1.shape),
            const(w23.shape),
            const(b12.shape),
            const(aux.shape),
        ],
        out_specs=pl.BlockSpec((tb, ACT_PAD), lambda i: (i, 0)),
        compiler_params=pltpu.CompilerParams(
            dimension_semantics=("parallel",),
            vmem_limit_bytes=32 * 1024 * 1024),     # v5e default is only 16 MiB
    )(s, w1, w23, b12, aux)

    if return_padded:
        return out
    # TODO(synk): for large B prefer return_padded=True and slice/consume the
    # padded slab in the downstream op to avoid this extra read+write pass.
    return out[:B, :action_dim]


# ---------------------------------------------------------------------------
# Parameter init / packing
# ---------------------------------------------------------------------------
def init_actor_params(key, state_dim, action_dim, a_min, a_max):
    """Deterministic f32 params mirroring the PyTorch Actor.initialization().
    Weights are stored (in, out) so forward is x @ W."""
    k1, k2, k3, k4, k5, k6 = jax.random.split(key, 6)
    # PyTorch code: f1 = 1/sqrt(fc1.weight.size(0)) = 1/sqrt(256) (as written).
    f1 = 1.0 / jnp.sqrt(jnp.float32(HIDDEN))
    f2 = 1.0 / jnp.sqrt(jnp.float32(HIDDEN))
    f3 = 0.003
    w1 = jax.random.uniform(k1, (state_dim, HIDDEN), jnp.float32, -f1, f1)
    b1 = jax.random.uniform(k2, (1, HIDDEN), jnp.float32, -f1, f1)
    w2 = jax.random.uniform(k3, (HIDDEN, HIDDEN), jnp.float32, -f2, f2)
    b2 = jax.random.uniform(k4, (1, HIDDEN), jnp.float32, -f2, f2)
    w3 = jax.random.uniform(k5, (HIDDEN, action_dim), jnp.float32, -f3, f3)
    b3 = jax.random.uniform(k6, (1, action_dim), jnp.float32, -f3, f3)
    a_min = jnp.asarray(a_min, jnp.float32).reshape(1, action_dim)
    a_max = jnp.asarray(a_max, jnp.float32).reshape(1, action_dim)
    off = (a_min + a_max) / 2.0
    gain = a_max - off
    return dict(w1=w1, b1=b1, w2=w2, b2=b2, w3=w3, b3=b3, gain=gain, off=off)


def pack_actor_params(raw, action_dim):
    """Pack raw f32 params into the coalesced kernel operands."""
    # Pad the action head to 128 lanes.
    w3p = jnp.zeros((HIDDEN, ACT_PAD), jnp.float32).at[:, :action_dim].set(raw["w3"])
    # Coalesce the two big weight matrices into one bf16 slab (one DMA).
    w23 = jnp.concatenate([raw["w2"], w3p], axis=1).astype(jnp.bfloat16)
    w1 = raw["w1"].astype(jnp.bfloat16)
    # b1/b2 merged; b3/gain/off merged (padded lanes zero => padded outputs 0).
    b12 = jnp.concatenate([raw["b1"], raw["b2"]], axis=0)        # (2, 256) f32
    aux = jnp.zeros((3, ACT_PAD), jnp.float32)
    aux = aux.at[0, :action_dim].set(raw["b3"][0])
    aux = aux.at[1, :action_dim].set(raw["gain"][0])
    aux = aux.at[2, :action_dim].set(raw["off"][0])
    return (w1, w23, b12, aux)


# ---------------------------------------------------------------------------
# References
# ---------------------------------------------------------------------------
def actor_reference_bf16(s, packed, action_dim):
    """Plain-JAX reference mirroring the kernel's bf16-operand / f32-acc math."""
    w1, w23, b12, aux = packed
    x = s.astype(jnp.bfloat16)
    h1 = jnp.maximum(jnp.dot(x, w1, preferred_element_type=jnp.float32)
                     + b12[0:1, :], 0.0)
    h2 = jnp.maximum(jnp.dot(h1.astype(jnp.bfloat16), w23[:, :HIDDEN],
                             preferred_element_type=jnp.float32)
                     + b12[1:2, :], 0.0)
    z = jnp.dot(h2.astype(jnp.bfloat16), w23[:, HIDDEN:],
                preferred_element_type=jnp.float32)
    y = aux[1:2, :] * jnp.tanh(z + aux[0:1, :]) + aux[2:3, :]
    return y[:, :action_dim].astype(jnp.bfloat16)


def actor_reference_f32(s, raw):
    """Full-precision reference matching the PyTorch forward."""
    h1 = jnp.maximum(s @ raw["w1"] + raw["b1"], 0.0)
    h2 = jnp.maximum(h1 @ raw["w2"] + raw["b2"], 0.0)
    return raw["gain"] * jnp.tanh(h2 @ raw["w3"] + raw["b3"]) + raw["off"]


# ---------------------------------------------------------------------------
# Self-test
# ---------------------------------------------------------------------------
if __name__ == "__main__":
    key = jax.random.PRNGKey(0)
    k_param, k_state, k_state2 = jax.random.split(key, 3)

    # Second-order integrator style env: small state / action dims.
    batch, state_dim, action_dim = 8, 4, 2
    a_min = [-2.0, -1.0]
    a_max = [2.0, 3.0]

    raw = init_actor_params(k_param, state_dim, action_dim, a_min, a_max)
    packed = pack_actor_params(raw, action_dim)

    # --- small batch (single grid step) ---
    s = jax.random.normal(k_state, (batch, state_dim), jnp.float32)
    out = jax.block_until_ready(actor_forward(s, packed, action_dim))
    assert out.shape == (batch, action_dim)

    ref_b = actor_reference_bf16(s, packed, action_dim).astype(jnp.float32)
    assert jnp.allclose(out.astype(jnp.float32), ref_b, atol=2e-2, rtol=2e-2), \
        (out, ref_b)

    ref_f = actor_reference_f32(s, raw)
    assert jnp.allclose(out.astype(jnp.float32), ref_f, atol=6e-2, rtol=6e-2), \
        (out, ref_f)

    # --- larger, non-multiple batch: exercises batch padding + >=2 grid steps ---
    B2 = 300
    s2 = jax.random.normal(k_state2, (B2, state_dim), jnp.float32)
    out2 = jax.block_until_ready(actor_forward(s2, packed, action_dim))
    assert out2.shape == (B2, action_dim)
    ref2 = actor_reference_f32(s2, raw)
    assert jnp.allclose(out2.astype(jnp.float32), ref2, atol=6e-2, rtol=6e-2)

    print("KERNEL_OK")
</pallas_src>

<mosaic_0001>
module attributes {stable_mosaic.version = 11 : i64} {
  func.func @actor_kernel(%arg0: i32, %arg1: memref<16x4xbf16, #tpu.memory_space<vmem>>, %arg2: memref<4x256xbf16, #tpu.memory_space<vmem>>, %arg3: memref<256x384xbf16, #tpu.memory_space<vmem>>, %arg4: memref<2x256xf32, #tpu.memory_space<vmem>>, %arg5: memref<3x128xf32, #tpu.memory_space<vmem>>, %arg6: memref<16x128xbf16, #tpu.memory_space<vmem>>) attributes {dimension_semantics = [#tpu.dimension_semantics<parallel>], iteration_bounds = array<i64: 1>, scalar_prefetch = 0 : i64, scratch_operands = 0 : i64, tpu.core_type = #tpu.core_type<tc>, window_params = [{transform_indices = @transform_0, window_bounds = array<i64: 16, 4>}, {pipeline_mode = #tpu.pipeline_mode<synchronous>, transform_indices = @transform_1, window_bounds = array<i64: 4, 256>}, {pipeline_mode = #tpu.pipeline_mode<synchronous>, transform_indices = @transform_2, window_bounds = array<i64: 256, 384>}, {pipeline_mode = #tpu.pipeline_mode<synchronous>, transform_indices = @transform_3, window_bounds = array<i64: 2, 256>}, {pipeline_mode = #tpu.pipeline_mode<synchronous>, transform_indices = @transform_4, window_bounds = array<i64: 3, 128>}, {transform_indices = @transform_5, window_bounds = array<i64: 16, 128>}]} {
    %c0 = arith.constant 0 : index
    %c0_0 = arith.constant 0 : index
    %0 = vector.load %arg1[%c0, %c0_0] : memref<16x4xbf16, #tpu.memory_space<vmem>>, vector<16x4xbf16>
    %c0_1 = arith.constant 0 : index
    %c0_2 = arith.constant 0 : index
    %1 = vector.load %arg2[%c0_1, %c0_2] : memref<4x256xbf16, #tpu.memory_space<vmem>>, vector<4x256xbf16>
    %cst = arith.constant dense<0.000000e+00> : vector<16x256xf32>
    %2 = tpu.matmul %0, %1, %cst {dimension_numbers = #tpu.dot_dimension_numbers<[1], [0], [0], [1], [0, 0, 1, 1], [], []>} : vector<16x4xbf16>, vector<4x256xbf16>, vector<16x256xf32> -> vector<16x256xf32>
    %c0_3 = arith.constant 0 : index
    %c0_4 = arith.constant 0 : index
    %3 = vector.load %arg4[%c0_3, %c0_4] : memref<2x256xf32, #tpu.memory_space<vmem>>, vector<1x256xf32>
    %4 = vector.broadcast %3 : vector<1x256xf32> to vector<16x256xf32>
    %5 = arith.addf %2, %4 : vector<16x256xf32>
    %cst_5 = arith.constant 0.000000e+00 : f32
    %6 = vector.broadcast %cst_5 : f32 to vector<16x256xf32>
    %7 = arith.maximumf %5, %6 : vector<16x256xf32>
    %8 = arith.truncf %7 : vector<16x256xf32> to vector<16x256xbf16>
    %c0_6 = arith.constant 0 : index
    %c0_7 = arith.constant 0 : index
    %9 = vector.load %arg3[%c0_6, %c0_7] : memref<256x384xbf16, #tpu.memory_space<vmem>>, vector<256x256xbf16>
    %cst_8 = arith.constant dense<0.000000e+00> : vector<16x256xf32>
    %10 = tpu.matmul %8, %9, %cst_8 {dimension_numbers = #tpu.dot_dimension_numbers<[1], [0], [0], [1], [0, 0, 1, 1], [], []>} : vector<16x256xbf16>, vector<256x256xbf16>, vector<16x256xf32> -> vector<16x256xf32>
    %c1 = arith.constant 1 : index
    %c0_9 = arith.constant 0 : index
    %11 = vector.load %arg4[%c1, %c0_9] : memref<2x256xf32, #tpu.memory_space<vmem>>, vector<1x256xf32>
    %12 = vector.broadcast %11 : vector<1x256xf32> to vector<16x256xf32>
    %13 = arith.addf %10, %12 : vector<16x256xf32>
    %cst_10 = arith.constant 0.000000e+00 : f32
    %14 = vector.broadcast %cst_10 : f32 to vector<16x256xf32>
    %15 = arith.maximumf %13, %14 : vector<16x256xf32>
    %16 = arith.truncf %15 : vector<16x256xf32> to vector<16x256xbf16>
    %c0_11 = arith.constant 0 : index
    %c256 = arith.constant 256 : index
    %17 = vector.load %arg3[%c0_11, %c256] : memref<256x384xbf16, #tpu.memory_space<vmem>>, vector<256x128xbf16>
    %cst_12 = arith.constant dense<0.000000e+00> : vector<16x128xf32>
    %18 = tpu.matmul %16, %17, %cst_12 {dimension_numbers = #tpu.dot_dimension_numbers<[1], [0], [0], [1], [0, 0, 1, 1], [], []>} : vector<16x256xbf16>, vector<256x128xbf16>, vector<16x128xf32> -> vector<16x128xf32>
    %c0_13 = arith.constant 0 : index
    %c0_14 = arith.constant 0 : index
    %19 = vector.load %arg5[%c0_13, %c0_14] : memref<3x128xf32, #tpu.memory_space<vmem>>, vector<1x128xf32>
    %c1_15 = arith.constant 1 : index
    %c0_16 = arith.constant 0 : index
    %20 = vector.load %arg5[%c1_15, %c0_16] : memref<3x128xf32, #tpu.memory_space<vmem>>, vector<1x128xf32>
    %c2 = arith.constant 2 : index
    %c0_17 = arith.constant 0 : index
    %21 = vector.load %arg5[%c2, %c0_17] : memref<3x128xf32, #tpu.memory_space<vmem>>, vector<1x128xf32>
    %22 = vector.broadcast %19 : vector<1x128xf32> to vector<16x128xf32>
    %23 = arith.addf %18, %22 : vector<16x128xf32>
    %24 = math.tanh %23 : vector<16x128xf32>
    %25 = vector.broadcast %20 : vector<1x128xf32> to vector<16x128xf32>
    %26 = arith.mulf %25, %24 : vector<16x128xf32>
    %27 = vector.broadcast %21 : vector<1x128xf32> to vector<16x128xf32>
    %28 = arith.addf %26, %27 : vector<16x128xf32>
    %29 = arith.truncf %28 : vector<16x128xf32> to vector<16x128xbf16>
    %c0_18 = arith.constant 0 : index
    %c0_19 = arith.constant 0 : index
    %30 = vector.load %arg6[%c0_18, %c0_19] : memref<16x128xbf16, #tpu.memory_space<vmem>>, vector<16x128xbf16>
    tpu.vector_store %arg6[%c0_18, %c0_19], %29 {strides = array<i32>} : memref<16x128xbf16, #tpu.memory_space<vmem>>, vector<16x128xbf16>,
    return
  }
  func.func @transform_0(%arg0: i32) -> (i32, i32) {
    %c0_i32 = arith.constant 0 : i32
    %c0_i32_0 = arith.constant 0 : i32
    return %arg0, %c0_i32 : i32, i32
  }
  func.func @transform_1(%arg0: i32) -> (i32, i32) {
    %c0_i32 = arith.constant 0 : i32
    %c0_i32_0 = arith.constant 0 : i32
    %c0_i32_1 = arith.constant 0 : i32
    return %c0_i32, %c0_i32_0 : i32, i32
  }
  func.func @transform_2(%arg0: i32) -> (i32, i32) {
    %c0_i32 = arith.constant 0 : i32
    %c0_i32_0 = arith.constant 0 : i32
    %c0_i32_1 = arith.constant 0 : i32
    return %c0_i32, %c0_i32_0 : i32, i32
  }
  func.func @transform_3(%arg0: i32) -> (i32, i32) {
    %c0_i32 = arith.constant 0 : i32
    %c0_i32_0 = arith.constant 0 : i32
    %c0_i32_1 = arith.constant 0 : i32
    return %c0_i32, %c0_i32_0 : i32, i32
  }
  func.func @transform_4(%arg0: i32) -> (i32, i32) {
    %c0_i32 = arith.constant 0 : i32
    %c0_i32_0 = arith.constant 0 : i32
    %c0_i32_1 = arith.constant 0 : i32
    return %c0_i32, %c0_i32_0 : i32, i32
  }
  func.func @transform_5(%arg0: i32) -> (i32, i32) {
    %c0_i32 = arith.constant 0 : i32
    %c0_i32_0 = arith.constant 0 : i32
    return %arg0, %c0_i32 : i32, i32
  }
}

</mosaic_0001>

<bundles_post_ra>
// kernel: tpu_custom_call.1
= control target key start
LH: loop header
LB: loop body
LE: loop exit
PB: predicated region body
PF: predicated region fallthrough
CT: control target
= control target key end

     0   :  { %10 = vsyncpa [#allocation3], 0  ;;  %s936_s0 = inlined_call_operand.vmem [shape: bf16[16,4], index: 0, kind: input, shape index: {}]   ;;  %s937_s1 = inlined_call_operand.vmem [shape: bf16[4,256], index: 1, kind: input, shape index: {}]   ;;  %s938_s2 = inlined_call_operand.hbm [shape: bf16[256,384], index: 2, kind: input, shape index: {}]   ;;  %s939_s3 = inlined_call_operand.vmem [shape: f32[2,256], index: 3, kind: input, shape index: {}]   ;;  %s940_s4 = inlined_call_operand.vmem [shape: f32[3,128], index: 4, kind: input, shape index: {}]   ;;  %s941_s5 = inlined_call_operand.hbm [shape: bf16[16,128], index: 5, kind: output, shape index: {}]  }
   0x1   :  { %11 = vsyncpa [#allocation4], 0  ;;  %s20_s20 = sshll.u32 %s938_s2, 4  ;;  %s869_s21 = smov [#allocation2]   ;;  %s21_s20 = int_to_ptr.hbm [resolvable:$true] %s20_s20 }
   0x2   :  { %s22_s22 = sshll.u32 %s869_s21, 4  ;;  %s870_s23 = smov 192   ;;  %s23_s22 = int_to_ptr.vmem [resolvable:$true] %s22_s22 }
   0x3   :  { %s871_s24 = smov 12  }
   0x4   :  { %28 = dma.hbm_to_vmem [thread:$0]  %s21_s20, 6144, %s23_s22, [#allocation3], %s870_s23, %s870_s23, %s871_s24  }
   0x5   :  { %865 = dma.done.wait [#allocation3], 6144  }
   0x6   :  { %866 = vsyncadd [#allocation3], 4294961152  ;;  %v40_v0 = vld [vmem:[%s937_s1] sm:$0xf]  ;;  %v616_v1 = vld [vmem:[#allocation2 + $0xa8] sm:$0xf] }
   0x7   :  { %53 = vst [vmem:[#allocation1] ss:$4 sm:$0xff] %v40_v0  ;;  %v766_v2 = vld [vmem:[#allocation2 + $0xb0] sm:$0xf0]  ;;  %v680_v3 = vld [vmem:[#allocation2 + $0x168] sm:$0xf] }
   0x8   :  { %v617_v4 = vor.u32 %v766_v2, %v616_v1  ;;  %v782_v5 = vld [vmem:[#allocation2 + $0x170] sm:$0xf0]  ;;  %v765_v6 = vld [vmem:[#allocation2 + $0xac] sm:$0xf]  ;;  %v618_v7 = vld [vmem:[#allocation2 + $0xb4] sm:$0xf0] }
   0x9   :  { %v681_v8 = vor.u32 %v782_v5, %v680_v3  ;;  %v781_v9 = vld [vmem:[#allocation2 + $0x16c] sm:$0xf]  ;;  %v682_v10 = vld [vmem:[#allocation2 + $0x174] sm:$0xf0]  ;;  %v608_v11 = vld [vmem:[#allocation2 + $0x90] sm:$0xf]  ;;  %v621_v22 = vor.u32 %v765_v6, %v618_v7 }
   0xa   :  { %298 = vmatpush.bf16.msra.mxu2 %v617_v4  ;;  %v764_v12 = vld [vmem:[#allocation2 + $0x98] sm:$0xf0]  ;;  %v672_v13 = vld [vmem:[#allocation2 + $0x150] sm:$0xf]  ;;  %vm60_vm0 = vcmask 1041408   ;;  %v685_v23 = vor.u32 %v781_v9, %v682_v10  ;;  %vm56_vm1 = vcmask 31744  }
   0xb   :  { %v780_v14 = vld [vmem:[#allocation2 + $0x158] sm:$0xf0]  ;;  %312 = vmatpush.bf16.msra.mxu3 %v681_v8  ;;  %v609_v15 = vor.u32 %v764_v12, %v608_v11  ;;  %v763_v17 = vld [vmem:[#allocation2 + $0x94] sm:$0xf]  ;;  %v610_v18 = vld [vmem:[#allocation2 + $0x9c] sm:$0xf0] }
   0xc   :  { %v673_v16 = vor.u32 %v780_v14, %v672_v13  ;;  %v779_v19 = vld [vmem:[#allocation2 + $0x154] sm:$0xf]  ;;  %v600_v20 = vld [vmem:[#allocation2 + $0x78] sm:$0xf]  ;;  %v762_v21 = vld [vmem:[#allocation2 + $0x80] sm:$0xf0]  ;;  %v613_v36 = vor.u32 %v763_v17, %v610_v18 }
   0xd   :  { %v674_v24 = vld [vmem:[#allocation2 + $0x15c] sm:$0xf0]  ;;  %v664_v25 = vld [vmem:[#allocation2 + $0x138] sm:$0xf]  ;;  %v778_v26 = vld [vmem:[#allocation2 + $0x140] sm:$0xf0]  ;;  %v601_v29 = vor.u32 %v762_v21, %v600_v20 }
   0xe   :  { %v54_v27 = vld.sshfl [vmem:[#allocation1] sm:$0xff pattern:$0x73625140]  ;;  %v55_v28 = vld.sshfl [vmem:[#allocation1 + $0x8] sm:$0xff pattern:$0x73625140]  ;;  %299 = vmatpush.bf16.msra.mxu2 %v609_v15  ;;  %v665_v33 = vor.u32 %v778_v26, %v664_v25  ;;  %v677_v37 = vor.u32 %v779_v19, %v674_v24 }
   0xf   :  { %v61_v30 = vsel %vm60_vm0, %v54_v27, 0  ;;  %v63_v31 = vsel %vm60_vm0, %v55_v28, 0  ;;  %v750_v32 = vld [vmem:[%s936_s0] sm:$0xff]  ;;  %313 = vmatpush.bf16.msra.mxu3 %v673_v16  ;;  %v592_v34 = vld [vmem:[#allocation2 + $0x60] sm:$0xf]  ;;  %s872_s10 = smov [#allocation5]  }
  0x10   :  { %72 = vmatpush.bf16.msra.mxu0 %v61_v30  ;;  %86 = vmatpush.bf16.msra.mxu1 %v63_v31  ;;  %v760_v35 = vld [vmem:[#allocation2 + $0x68] sm:$0xf0]  ;;  %v761_v38 = vld [vmem:[#allocation2 + $0x7c] sm:$0xf]  ;;  %v656_v39 = vld [vmem:[#allocation2 + $0x120] sm:$0xf] }
  0x11   :  { %v776_v40 = vld [vmem:[#allocation2 + $0x128] sm:$0xf0]  ;;  %v602_v41 = vld [vmem:[#allocation2 + $0x84] sm:$0xf0]  ;;  %v777_v42 = vld [vmem:[#allocation2 + $0x13c] sm:$0xf]  ;;  %v593_v44 = vor.u32 %v760_v35, %v592_v34 }
  0x12   :  { %300 = vmatpush.bf16.msra.mxu2 %v601_v29  ;;  %v666_v43 = vld [vmem:[#allocation2 + $0x144] sm:$0xf0]  ;;  %v657_v45 = vor.u32 %v776_v40, %v656_v39  ;;  %v605_v46 = vor.u32 %v761_v38, %v602_v41  ;;  %v759_v48 = vld [vmem:[#allocation2 + $0x64] sm:$0xf]  ;;  %v594_v49 = vld [vmem:[#allocation2 + $0x6c] sm:$0xf0] }
  0x13   :  { %555 = vmatmul.msk.bf16.vlgmr.msra.gmra.mxu0 %vm56_vm1, %v750_v32  ;;  %556 = vmatmul.msk.bf16.vlgmr.msra.gmra.mxu1 %vm56_vm1, %v750_v32  ;;  %v669_v47 = vor.u32 %v777_v42, %v666_v43  ;;  %v775_v50 = vld [vmem:[#allocation2 + $0x124] sm:$0xf]  ;;  %v658_v51 = vld [vmem:[#allocation2 + $0x12c] sm:$0xf0]  ;;  %v597_v52 = vor.u32 %v759_v48, %v594_v49  ;;  %v584_v54 = vld [vmem:[#allocation2 + $0x48] sm:$0xf] }
  0x14   :  { %326 = vmatpush.bf16.msrb.mxu0 %v621_v22  ;;  %340 = vmatpush.bf16.msrb.mxu1 %v685_v23  ;;  %v661_v53 = vor.u32 %v775_v50, %v658_v51  ;;  %v758_v55 = vld [vmem:[#allocation2 + $0x50] sm:$0xf0]  ;;  %v648_v56 = vld [vmem:[#allocation2 + $0x108] sm:$0xf]  ;;  %v757_v59 = vld [vmem:[#allocation2 + $0x4c] sm:$0xf] }
  0x15   :  { %314 = vmatpush.bf16.msra.mxu3 %v665_v33  ;;  %v585_v57 = vor.u32 %v758_v55, %v584_v54  ;;  %v774_v58 = vld [vmem:[#allocation2 + $0x110] sm:$0xf0]  ;;  %v586_v60 = vld [vmem:[#allocation2 + $0x54] sm:$0xf0]  ;;  %v773_v63 = vld [vmem:[#allocation2 + $0x10c] sm:$0xf] }
  0x16   :  { %301 = vmatpush.bf16.msra.mxu2 %v593_v44  ;;  %v649_v61 = vor.u32 %v774_v58, %v648_v56  ;;  %v589_v62 = vor.u32 %v757_v59, %v586_v60  ;;  %v650_v0 = vld [vmem:[#allocation2 + $0x114] sm:$0xf0]  ;;  %v576_v2 = vld [vmem:[#allocation2 + $0x30] sm:$0xf]  ;;  %v756_v3 = vld [vmem:[#allocation2 + $0x38] sm:$0xf0] }
  0x17   :  { %v653_v1 = vor.u32 %v773_v63, %v650_v0  ;;  %v577_v4 = vor.u32 %v756_v3, %v576_v2  ;;  %v640_v5 = vld [vmem:[#allocation2 + $0xf0] sm:$0xf]  ;;  %v772_v6 = vld [vmem:[#allocation2 + $0xf8] sm:$0xf0]  ;;  %v755_v7 = vld [vmem:[#allocation2 + $0x34] sm:$0xf] }
  0x18   :  { %327 = vmatpush.bf16.msrb.mxu0 %v613_v36  ;;  %341 = vmatpush.bf16.msrb.mxu1 %v677_v37  ;;  %v641_v8 = vor.u32 %v772_v6, %v640_v5  ;;  %v578_v9 = vld [vmem:[#allocation2 + $0x3c] sm:$0xf0]  ;;  %v771_v10 = vld [vmem:[#allocation2 + $0xf4] sm:$0xf]  ;;  %v568_v14 = vld [vmem:[#allocation2 + $0x18] sm:$0xf] }
  0x19   :  { %315 = vmatpush.bf16.msra.mxu3 %v657_v45  ;;  %v642_v11 = vld [vmem:[#allocation2 + $0xfc] sm:$0xf0]  ;;  %v581_v12 = vor.u32 %v755_v7, %v578_v9  ;;  %v754_v15 = vld [vmem:[#allocation2 + $0x20] sm:$0xf0]  ;;  %v632_v16 = vld [vmem:[#allocation2 + $0xd8] sm:$0xf] }
  0x1a   :  { %302 = vmatpush.bf16.msra.mxu2 %v585_v57  ;;  %v645_v13 = vor.u32 %v771_v10, %v642_v11  ;;  %v569_v17 = vor.u32 %v754_v15, %v568_v14  ;;  %v770_v18 = vld [vmem:[#allocation2 + $0xe0] sm:$0xf0]  ;;  %v753_v19 = vld [vmem:[#allocation2 + $0x1c] sm:$0xf]  ;;  %v570_v20 = vld [vmem:[#allocation2 + $0x24] sm:$0xf0] }
  0x1b   :  { %v633_v21 = vor.u32 %v770_v18, %v632_v16  ;;  %v573_v22 = vor.u32 %v753_v19, %v570_v20  ;;  %v769_v23 = vld [vmem:[#allocation2 + $0xdc] sm:$0xf]  ;;  %v634_v24 = vld [vmem:[#allocation2 + $0xe4] sm:$0xf0]  ;;  %v560_v26 = vld [vmem:[#allocation2] sm:$0xf] }
  0x1c   :  { %328 = vmatpush.bf16.msrb.mxu0 %v605_v46  ;;  %342 = vmatpush.bf16.msrb.mxu1 %v669_v47  ;;  %v637_v25 = vor.u32 %v769_v23, %v634_v24  ;;  %v752_v27 = vld [vmem:[#allocation2 + $0x8] sm:$0xf0]  ;;  %v624_v28 = vld [vmem:[#allocation2 + $0xc0] sm:$0xf]  ;;  %v751_v31 = vld [vmem:[#allocation2 + $0x4] sm:$0xf] }
  0x1d   :  { %316 = vmatpush.bf16.msra.mxu3 %v649_v61  ;;  %v561_v29 = vor.u32 %v752_v27, %v560_v26  ;;  %v768_v30 = vld [vmem:[#allocation2 + $0xc8] sm:$0xf0]  ;;  %v562_v32 = vld [vmem:[#allocation2 + $0xc] sm:$0xf0]  ;;  %v767_v35 = vld [vmem:[#allocation2 + $0xc4] sm:$0xf] }
  0x1e   :  { %303 = vmatpush.bf16.msra.mxu2 %v577_v4  ;;  %v625_v33 = vor.u32 %v768_v30, %v624_v28  ;;  %v565_v34 = vor.u32 %v751_v31, %v562_v32  ;;  %v626_v36 = vld [vmem:[#allocation2 + $0xcc] sm:$0xf0]  ;;  %v798_v39 = vld [vmem:[#allocation2 + $0x178] sm:$0xf0]  ;;  %v744_v40 = vld [vmem:[#allocation2 + $0x158] sm:$0xf] }
  0x1f   :  { %v629_v37 = vor.u32 %v767_v35, %v626_v36  ;;  %v748_v38 = vld [vmem:[#allocation2 + $0x170] sm:$0xf]  ;;  %v797_v42 = vld [vmem:[#allocation2 + $0x160] sm:$0xf0]  ;;  %v790_v44 = vld [vmem:[#allocation2 + $0xb8] sm:$0xf0] }
  0x20   :  { %329 = vmatpush.bf16.msrb.mxu0 %v597_v52  ;;  %343 = vmatpush.bf16.msrb.mxu1 %v661_v53  ;;  %v749_v41 = vor.u32 %v798_v39, %v748_v38  ;;  %v716_v43 = vld [vmem:[#allocation2 + $0xb0] sm:$0xf]  ;;  %v712_v46 = vld [vmem:[#allocation2 + $0x98] sm:$0xf]  ;;  %v745_v47 = vor.u32 %v797_v42, %v744_v40  ;;  %v789_v48 = vld [vmem:[#allocation2 + $0xa0] sm:$0xf0] }
  0x21   :  { %317 = vmatpush.bf16.msra.mxu3 %v641_v8  ;;  %v717_v45 = vor.u32 %v790_v44, %v716_v43  ;;  %v740_v49 = vld [vmem:[#allocation2 + $0x140] sm:$0xf]  ;;  %v796_v50 = vld [vmem:[#allocation2 + $0x148] sm:$0xf0]  ;;  %v713_v51 = vor.u32 %v789_v48, %v712_v46  ;;  %v736_v53 = vld [vmem:[#allocation2 + $0x128] sm:$0xf] }
  0x22   :  { %304 = vmatpush.bf16.msra.mxu2 %v569_v17  ;;  %v741_v52 = vor.u32 %v796_v50, %v740_v49  ;;  %v795_v54 = vld [vmem:[#allocation2 + $0x130] sm:$0xf0]  ;;  %v41_v56 = vld [vmem:[%s939_s3] ss:$2 sm:$0x3]  ;;  %s536_s11 = sshll.u32 %s872_s10, 4  ;;  %s537_s11 = int_to_ptr.vmem [resolvable:$true] %s536_s11 }
  0x23   :  { %v737_v55 = vor.u32 %v795_v54, %v736_v53  ;;  %v43_v59 = vperm.slane %v41_v56, 0  ;;  %v44_v60 = vperm.slane %v41_v56, 1  ;;  %v708_v9 = vld [vmem:[#allocation2 + $0x80] sm:$0xf]  ;;  %v788_v10 = vld [vmem:[#allocation2 + $0x88] sm:$0xf0] }
  0x24   :  { %330 = vmatpush.bf16.msrb.mxu0 %v589_v62  ;;  %344 = vmatpush.bf16.msrb.mxu1 %v653_v1  ;;  %v709_v11 = vor.u32 %v788_v10, %v708_v9  ;;  %v704_v15 = vld [vmem:[#allocation2 + $0x68] sm:$0xf]  ;;  %v787_v16 = vld [vmem:[#allocation2 + $0x70] sm:$0xf0]  ;;  %v728_v18 = vld [vmem:[#allocation2 + $0xf8] sm:$0xf] }
  0x25   :  { %318 = vmatpush.bf16.msra.mxu3 %v633_v21  ;;  %v705_v17 = vor.u32 %v787_v16, %v704_v15  ;;  %v793_v19 = vld [vmem:[#allocation2 + $0x100] sm:$0xf0]  ;;  %v700_v21 = vld [vmem:[#allocation2 + $0x50] sm:$0xf]  ;;  %v724_v24 = vld [vmem:[#allocation2 + $0xe0] sm:$0xf] }
  0x26   :  { %305 = vmatpush.bf16.msra.mxu2 %v561_v29  ;;  %v729_v20 = vor.u32 %v793_v19, %v728_v18  ;;  %v696_v27 = vld [vmem:[#allocation2 + $0x38] sm:$0xf]  ;;  %v785_v28 = vld [vmem:[#allocation2 + $0x40] sm:$0xf0]  ;;  %v720_v30 = vld [vmem:[#allocation2 + $0xc8] sm:$0xf] }
  0x27   :  { %v697_v29 = vor.u32 %v785_v28, %v696_v27  ;;  %v791_v31 = vld [vmem:[#allocation2 + $0xd0] sm:$0xf0]  ;;  %v688_v36 = vld [vmem:[#allocation2 + $0x8] sm:$0xf]  ;;  %v811_v9 = vld [vmem:[%s940_s4 + $0x1] ss:$0 sm:$0xff] }
  0x28   :  { %331 = vmatpush.bf16.msrb.mxu0 %v581_v12  ;;  %345 = vmatpush.bf16.msrb.mxu1 %v645_v13  ;;  %v732_v12 = vld [vmem:[#allocation2 + $0x110] sm:$0xf]  ;;  %v794_v13 = vld [vmem:[#allocation2 + $0x118] sm:$0xf0]  ;;  %v721_v32 = vor.u32 %v791_v31, %v720_v30  ;;  %s538_s14 = sshll.u32 %s941_s5, 4  ;;  %s873_s15 = smov 64   ;;  %s539_s14 = int_to_ptr.hbm [resolvable:$true] %s538_s14 }
  0x29   :  { %319 = vmatpush.bf16.msra.mxu3 %v625_v33  ;;  %v733_v14 = vor.u32 %v794_v13, %v732_v12  ;;  %v692_v33 = vld [vmem:[#allocation2 + $0x20] sm:$0xf]  ;;  %v557_v39 = vld [vmem:[%s939_s3 + $0x1] ss:$2 sm:$0x3]  ;;  %s874_s16 = smov 4  }
  0x2a   :  { %492 = vmatpush.bf16.msrb.mxu2 %v717_v45  ;;  %v135_v42 = vperm.slane %v557_v39, 1  ;;  %v134_v46 = vperm.slane %v557_v39, 0  ;;  %v812_v12 = vld [vmem:[%s940_s4 + $0x2] ss:$0 sm:$0xff] }
  0x2c   :  { %332 = vmatpush.bf16.msrb.mxu0 %v573_v22  ;;  %346 = vmatpush.bf16.msrb.mxu1 %v637_v25  ;;  %v786_v22 = vld [vmem:[#allocation2 + $0x58] sm:$0xf0]  ;;  %v792_v25 = vld [vmem:[#allocation2 + $0xe8] sm:$0xf0] }
  0x2d   :  { %506 = vmatpush.bf16.msrb.mxu3 %v749_v41  ;;  %v701_v23 = vor.u32 %v786_v22, %v700_v21  ;;  %v725_v26 = vor.u32 %v792_v25, %v724_v24 }
  0x2e   :  { %493 = vmatpush.bf16.msrb.mxu2 %v713_v51 }
  0x30   :  { %333 = vmatpush.bf16.msrb.mxu0 %v565_v34  ;;  %347 = vmatpush.bf16.msrb.mxu1 %v629_v37  ;;  %v784_v34 = vld [vmem:[#allocation2 + $0x28] sm:$0xf0]  ;;  %v783_v37 = vld [vmem:[#allocation2 + $0x10] sm:$0xf0] }
  0x31   :  { %507 = vmatpush.bf16.msrb.mxu3 %v745_v47  ;;  %v693_v35 = vor.u32 %v784_v34, %v692_v33  ;;  %v689_v38 = vor.u32 %v783_v37, %v688_v36 }
  0x32   :  { %494 = vmatpush.bf16.msrb.mxu2 %v709_v11 }
  0x35   :  { %508 = vmatpush.bf16.msrb.mxu3 %v741_v52 }
  0x36   :  { %495 = vmatpush.bf16.msrb.mxu2 %v705_v17 }
  0x39   :  { %509 = vmatpush.bf16.msrb.mxu3 %v737_v55 }
  0x3a   :  { %496 = vmatpush.bf16.msrb.mxu2 %v701_v23 }
  0x3d   :  { %510 = vmatpush.bf16.msrb.mxu3 %v733_v14 }
  0x3e   :  { %497 = vmatpush.bf16.msrb.mxu2 %v697_v29 }
  0x41   :  { %511 = vmatpush.bf16.msrb.mxu3 %v729_v20 }
  0x42   :  { %498 = vmatpush.bf16.msrb.mxu2 %v693_v35 }
  0x45   :  { %512 = vmatpush.bf16.msrb.mxu3 %v725_v26 }
  0x46   :  { %499 = vmatpush.bf16.msrb.mxu2 %v689_v38 }
  0x49   :  { %513 = vmatpush.bf16.msrb.mxu3 %v721_v32 }
  0x90   :  { %v74_v57 = vpop.f32.mrf.mxu0  ;;  %v88_v58 = vpop.f32.mrf.mxu1 }
  0x91   :  { %v75_v61 = vadd.f32 %v74_v57, %v43_v59  ;;  %v89_v62 = vadd.f32 %v88_v58, %v44_v60 }
  0x93   :  { %v93_v3 = vmax.f32 %v75_v61, 0.0  ;;  %v94_v4 = vmax.f32 %v89_v62, 0.0 }
  0x98   :  { %v76_v63 = vpop.f32.mrf.mxu0  ;;  %v90_v0 = vpop.f32.mrf.mxu1 }
  0x99   :  { %v77_v1 = vadd.f32 %v76_v63, %v43_v59  ;;  %v91_v2 = vadd.f32 %v90_v0, %v44_v60  ;;  %v810_v0 = vld [vmem:[%s940_s4] ss:$0 sm:$0xff] }
  0x9b   :  { %v95_v5 = vmax.f32 %v77_v1, 0.0  ;;  %v96_v6 = vmax.f32 %v91_v2, 0.0 }
  0x9d   :  { %v97_v7 = vpack.c.bf16 %v95_v5, %v93_v3  ;;  %v98_v8 = vpack.c.bf16 %v96_v6, %v94_v4 }
  0x9f   :  { %306 = vmatmul.bf16.vlgmr.msra.gmra.mxu2 %v97_v7  ;;  %320 = vmatmul.bf16.vlgmr.msra.gmra.mxu3 %v98_v8 }
  0xa0   :  { %334 = vmatmul.bf16.vlgmr.msrb.gmra.mxu0 %v97_v7  ;;  %348 = vmatmul.bf16.vlgmr.msrb.gmra.mxu1 %v98_v8 }
 0x11d   :  { %v335_v40 = vpop.f32.mrf.mxu0  ;;  %v349_v41 = vpop.f32.mrf.mxu1 }
 0x11e   :  { %v336_v43 = vadd.f32 %v335_v40, %v135_v42 }
 0x120   :  { %v350_v48 = vadd.f32 %v349_v41, %v336_v43 }
 0x122   :  { %v307_v44 = vpop.f32.mrf.mxu2  ;;  %v321_v45 = vpop.f32.mrf.mxu3  ;;  %v355_v53 = vmax.f32 %v350_v48, 0.0 }
 0x123   :  { %v308_v50 = vadd.f32 %v307_v44, %v134_v46 }
 0x125   :  { %v337_v47 = vpop.f32.mrf.mxu0  ;;  %v351_v51 = vpop.f32.mrf.mxu1  ;;  %v322_v56 = vadd.f32 %v321_v45, %v308_v50 }
 0x126   :  { %v338_v49 = vadd.f32 %v337_v47, %v135_v42 }
 0x127   :  { %v354_v61 = vmax.f32 %v322_v56, 0.0 }
 0x128   :  { %v352_v52 = vadd.f32 %v351_v51, %v338_v49 }
 0x12a   :  { %v357_v54 = vmax.f32 %v352_v52, 0.0  ;;  %v309_v55 = vpop.f32.mrf.mxu2  ;;  %v323_v59 = vpop.f32.mrf.mxu3 }
 0x12b   :  { %v310_v57 = vadd.f32 %v309_v55, %v134_v46 }
 0x12c   :  { %v359_v58 = vpack.c.bf16 %v357_v54, %v355_v53 }
 0x12d   :  { %v324_v60 = vadd.f32 %v323_v59, %v310_v57 }
 0x12e   :  { %514 = vmatmul.bf16.vlgmr.msrb.gmra.mxu3 %v359_v58 }
 0x12f   :  { %v356_v62 = vmax.f32 %v324_v60, 0.0 }
 0x131   :  { %v358_v63 = vpack.c.bf16 %v356_v62, %v354_v61 }
 0x133   :  { %500 = vmatmul.bf16.vlgmr.msrb.gmra.mxu2 %v358_v63 }
 0x1b1   :  { %v515_v1 = vpop.f32.mrf.mxu3 }
 0x1b6   :  { %v501_v2 = vpop.f32.mrf.mxu2 }
 0x1b7   :  { %v502_v3 = vadd.f32 %v810_v0, %v501_v2 }
 0x1b9   :  { %v516_v4 = vadd.f32 %v515_v1, %v502_v3  ;;  %v517_v7 = vpop.f32.mrf.mxu3 }
 0x1bb   :  { %813 = vtanh.f32 %v516_v4 }
 0x1be   :  { %v503_v5 = vpop.f32.mrf.mxu2 }
 0x1bf   :  { %v504_v6 = vadd.f32 %v810_v0, %v503_v5 }
 0x1c1   :  { %v518_v8 = vadd.f32 %v517_v7, %v504_v6  ;;  %v814_v10 = vpop.eup %813 }
 0x1c2   :  { %v523_v11 = vmul.f32 %v814_v10, %v811_v9 }
 0x1c3   :  { %815 = vtanh.f32 %v518_v8 }
 0x1c4   :  { %v526_v15 = vadd.f32 %v812_v12, %v523_v11 }
 0x1c9   :  { %v816_v13 = vpop.eup %815 }
 0x1ca   :  { %v524_v14 = vmul.f32 %v816_v13, %v811_v9 }
 0x1cc   :  { %v527_v16 = vadd.f32 %v812_v12, %v524_v14 }
 0x1ce   :  { %v802_v17 = vpack.c.bf16 %v527_v16, %v526_v15 }
 0x1d0   :  { %803 = vst [vmem:[#allocation5] sm:$0xff] %v802_v17  }
 0x1d1   :  { %544 = dma.vmem_to_hbm [thread:$0]  %s537_s11, 128, %s539_s14, [#allocation4], %s873_s15, %s873_s15, %s874_s16  }
 0x1d2   :  { %867 = dma.done.wait [#allocation4], 128  }
 0x1d3   :  { %868 = vsyncadd [#allocation4], 4294967168 }
 0x1d4   :  { %549 = vsyncpa [#allocation3], 1 }
 0x1d5   :  { %550 = vsyncpa [#allocation4], 1 }

</bundles_post_ra>
